<compile_context>
chip_gen: v5e
topology: v5e:2x2
jax: 0.10.0
libtpu: 0.0.40
codegen_flags: <defaults>
</compile_context>

<pallas_src>
import functools

import jax
import jax.numpy as jnp
from jax.experimental import pallas as pl
from jax.experimental.pallas import tpu as pltpu


def _channel_shuffle_kernel(x_ref, o_ref, *, groups: int, channels: int):
    """Block shape (C, hw_tile): one load, in-register permute, one store."""
    cpg = channels // groups
    x = x_ref[...]                                  # (C, hw_tile) single load
    hw_tile = x.shape[-1]
    y = x.reshape(groups, cpg, hw_tile)             # split channel axis
    y = jnp.swapaxes(y, 0, 1)                       # (cpg, groups, hw_tile) — XLU work
    o_ref[...] = y.reshape(channels, hw_tile)       # one contiguous unmasked store


def _choose_hw_tile(hw: int, channels: int, itemsize: int,
                    vmem_budget_bytes: int, batch: int) -> int:
    """Pick the lane tile.

    (in + out) x double-buffer = 4 blocks of (C, hw_tile) must fit the budget.
    Prefer long (~2048-lane) tiles for DMA-row length / per-step-overhead
    amortization; tiles that are not full-dim must be multiples of 128.
    """
    cap = max(128, (vmem_budget_bytes // (4 * channels * itemsize)) // 128 * 128)
    target = min(2048, cap)
    if hw <= target:
        hw_tile = hw  # full-dim block: exempt from the 128-multiple rule, no ragged tail
        # Ensure >= 2 grid steps (v7x has 2 TCs; also gives the pipeline steps
        # to hide DMA) when the batch axis alone doesn't provide parallelism.
        if batch == 1 and hw >= 256:
            hw_tile = max(128, (hw // 2) // 128 * 128)
        return hw_tile
    return target  # multiple of 128; Pallas masks the ragged last tile


def channel_shuffle(
    x: jax.Array,
    groups: int,
    *,
    vmem_budget_bytes: int = 24 * 1024 * 1024,
) -> jax.Array:
    """Pallas equivalent of ChannelShuffle(groups).forward(x) for NCHW input."""
    B, C, H, W = x.shape
    assert C % groups == 0, "channels must be divisible by groups"
    cpg = C // groups
    if groups == 1 or cpg == 1:
        # Permutation degenerates to identity; skip the HBM round trip.
        return x

    hw = H * W
    x2 = x.reshape(B, C, hw)
    itemsize = jnp.dtype(x.dtype).itemsize

    hw_tile = _choose_hw_tile(hw, C, itemsize, vmem_budget_bytes, B)
    n_hw_tiles = pl.cdiv(hw, hw_tile)

    kernel = functools.partial(_channel_shuffle_kernel, groups=groups, channels=C)

    out = pl.pallas_call(
        kernel,
        out_shape=jax.ShapeDtypeStruct((B, C, hw), x.dtype),
        grid=(B, n_hw_tiles),
        in_specs=[pl.BlockSpec((None, C, hw_tile), lambda b, t: (b, 0, t))],
        out_specs=pl.BlockSpec((None, C, hw_tile), lambda b, t: (b, 0, t)),
        compiler_params=pltpu.CompilerParams(
            dimension_semantics=("parallel", "parallel"),
            vmem_limit_bytes=32 * 1024 * 1024,
        ),
    )(x2)

    return out.reshape(B, C, H, W)


def _reference_channel_shuffle(x: jax.Array, groups: int) -> jax.Array:
    B, C, H, W = x.shape
    c = C // groups
    y = x.reshape(B, groups, c, H, W)
    y = jnp.transpose(y, (0, 2, 1, 3, 4))
    return y.reshape(B, C, H, W)


if __name__ == "__main__":
    key = jax.random.PRNGKey(0)
    B, C, H, W = 2, 4, 16, 16
    groups = 2
    x = jax.random.normal(key, (B, C, H, W), dtype=jnp.float32)

    out = jax.block_until_ready(channel_shuffle(x, groups))
    ref = _reference_channel_shuffle(x, groups)
    assert out.shape == (B, C, H, W)
    assert jnp.allclose(out, ref), "Pallas channel shuffle mismatch vs reference"

    # Robustness: non-128-multiple spatial size (ragged / full-dim lane block)
    # and a larger group count.
    x2 = jax.random.normal(jax.random.PRNGKey(1), (1, 8, 7, 7), dtype=jnp.float32)
    out2 = jax.block_until_ready(channel_shuffle(x2, 4))
    ref2 = _reference_channel_shuffle(x2, 4)
    assert jnp.allclose(out2, ref2), "Pallas channel shuffle mismatch (ragged case)"

    # Degenerate case (identity) short-circuits without a kernel launch.
    x3 = jax.random.normal(jax.random.PRNGKey(2), (2, 4, 5, 5), dtype=jnp.float32)
    out3 = jax.block_until_ready(channel_shuffle(x3, 1))
    assert jnp.allclose(out3, x3)

    print("KERNEL_OK")
</pallas_src>

<mosaic_0001>
module attributes {stable_mosaic.version = 11 : i64} {
  func.func @_channel_shuffle_kernel(%arg0: i32, %arg1: i32, %arg2: memref<1x4x256xf32, #tpu.memory_space<vmem>>, %arg3: memref<1x4x256xf32, #tpu.memory_space<vmem>>) attributes {dimension_semantics = [#tpu.dimension_semantics<parallel>, #tpu.dimension_semantics<parallel>], iteration_bounds = array<i64: 2, 1>, scalar_prefetch = 0 : i64, scratch_operands = 0 : i64, tpu.core_type = #tpu.core_type<tc>, window_params = [{transform_indices = @transform_0, window_bounds = array<i64: 1, 4, 256>}, {transform_indices = @transform_1, window_bounds = array<i64: 1, 4, 256>}]} {
    %c0 = arith.constant 0 : index
    %c0_0 = arith.constant 0 : index
    %c0_1 = arith.constant 0 : index
    %0 = vector.load %arg2[%c0, %c0_0, %c0_1] : memref<1x4x256xf32, #tpu.memory_space<vmem>>, vector<1x4x256xf32>
    %1 = vector.shape_cast %0 : vector<1x4x256xf32> to vector<4x256xf32>
    %2 = vector.shape_cast %1 : vector<4x256xf32> to vector<2x2x256xf32>
    %3 = tpu.transpose %2, [1, 0, 2] : vector<2x2x256xf32> -> vector<2x2x256xf32>
    %4 = vector.shape_cast %3 : vector<2x2x256xf32> to vector<4x256xf32>
    %c0_2 = arith.constant 0 : index
    %c0_3 = arith.constant 0 : index
    %c0_4 = arith.constant 0 : index
    %5 = vector.load %arg3[%c0_2, %c0_3, %c0_4] : memref<1x4x256xf32, #tpu.memory_space<vmem>>, vector<1x4x256xf32>
    %6 = vector.shape_cast %5 : vector<1x4x256xf32> to vector<4x256xf32>
    %7 = vector.shape_cast %4 : vector<4x256xf32> to vector<1x4x256xf32>
    tpu.vector_store %arg3[%c0_2, %c0_3, %c0_4], %7 {strides = array<i32>} : memref<1x4x256xf32, #tpu.memory_space<vmem>>, vector<1x4x256xf32>,
    return
  }
  func.func @transform_0(%arg0: i32, %arg1: i32) -> (i32, i32, i32) {
    %c0_i32 = arith.constant 0 : i32
    %c0_i32_0 = arith.constant 0 : i32
    return %arg0, %c0_i32, %arg1 : i32, i32, i32
  }
  func.func @transform_1(%arg0: i32, %arg1: i32) -> (i32, i32, i32) {
    %c0_i32 = arith.constant 0 : i32
    %c0_i32_0 = arith.constant 0 : i32
    return %arg0, %c0_i32, %arg1 : i32, i32, i32
  }
}

</mosaic_0001>

<bundles_post_ra>
// kernel: tpu_custom_call.1
= control target key start
LH: loop header
LB: loop body
LE: loop exit
PB: predicated region body
PF: predicated region fallthrough
CT: control target
= control target key end

     0   :  { %6 = vsyncpa [#allocation3], 0  ;;  %s611_s0 = inlined_call_operand.hbm [shape: f32[2,4,256], index: 0, kind: input, shape index: {}]   ;;  %s612_s1 = inlined_call_operand.hbm [shape: f32[2,4,256], index: 1, kind: output, shape index: {}]  }
   0x1   :  { %8 = vsyncpa [#allocation3 + $0x1], 0 }
   0x2   :  { %9 = vsyncpa [#allocation4], 0 }
   0x3   :  { %11 = vsyncpa [#allocation4 + $0x1], 0  ;;  %s491_s6 = smov 0   ;;  %s493_s7 = smov 0  }
   0x4   :  { %s495_s8 = smov 0   ;;  %s497_s9 = smov 0  }
   0x5   :  { %s499_s10 = smov 0   ;;  %s501_s11 = smov 0  }
   0x6 LB: > { %s285_s12 = sadd.s32 4294967295, %s478_s11   ;;  %s286_s13 = sadd.s32 4294967294, %s478_s11   ;;  %s478_s11 = sphi %s501_s11, %s17_s11   ;;  %s474_s10 = sphi %s499_s10, %s621_s10   ;;  %s470_s9 = sphi %s497_s9, %s620_s9   ;;  %s466_s8 = sphi %s495_s8, %s619_s8   ;;  %s462_s7 = sphi %s493_s7, %s618_s7   ;;  %s458_s6 = sphi %s491_s6, %s617_s6  }
   0x7   : > { %s29_s14 = sadd.s32 1, %s474_s10  ;;  %s38_s15 = sadd.s32 1, %s466_s8 }
   0x8   : > { %p31_p0 = scmp.ge.s32.totalorder %s29_s14, 2  ;;  %p45_p1 = scmp.ne.s32.totalorder %s466_s8, %s462_s7 }
   0x9   : > { %p46_p2 = scmp.eq.s32.totalorder %s478_s11, 0  ;;  %p51_p3 = scmp.ne.s32.totalorder %s462_s7, %s458_s6 }
   0xa   : > { %s623_s14 = smov (%p31_p0, %s29_s14), 0  ;;  %p52_p5 = scmp.eq.s32.totalorder %s285_s12, 0 }
   0xb   : > { %p532_p4 = por %p46_p2, %p45_p1  ;;  %s33_s17 = ssub.s32 %s474_s10, %s623_s14 }
   0xc   : > { %p77_p6 = scmp.eq.s32.totalorder %s285_s12, 1  ;;  %p36_p7 = scmp.eq.s32.totalorder %s33_s17, 0 }
   0xd   : > { %p538_p8 = por %p52_p5, %p51_p3  ;;  %p83_p10 = scmp.eq.s32.totalorder %s286_s13, 1 }
   0xe   : > { %p542_p9 = por %p77_p6, %p45_p1  ;;  %p288_p12 = scmp.ge.s32.totalorder %s478_s11, 2 }
   0xf   : > { %s547_s20 = scalar_select %p36_p7, %s466_s8, %s38_s15  }
  0x10   : > { %p549_p11 = por %p83_p10, %p51_p3  ;;  %p315_p13 = scmp.lt.s32.totalorder %s478_s11, 2 }
  0x11   : > { %s103_s22 = sand.u32 1, %s466_s8   ;;  %s301_s24 = sshll.u32 %s474_s10, 3 }
  0x12   : > { %s289_s23 = sshll.u32 %s103_s22, 3  ;;  %s114_s27 = scalar_lea.hbm %s611_s0, %s301_s24 }
  0x13   : > { %s107_s28 = scalar_lea.vmem [#allocation2], %s289_s23  ;;  %s116_s30 = sshll.u32 %s114_s27, 4  ;;  %s117_s30 = int_to_ptr.hbm [resolvable:$true] %s116_s30 }
  0x14   : > { %s118_s29 = sshll.u32 %s107_s28, 4  ;;  %p308_p0 = pnand %p315_p13, %p532_p4  ;;  %s119_s29 = int_to_ptr.vmem [resolvable:$true] %s118_s29 }
  0x15   : > { %p292_p1 = scmp.ge.s32.totalorder %s478_s11, 1  ;;  %p123_p2 = scmp.lt.s32.totalorder %s478_s11, 3 }
  0x16   : > { %s104_s2 = scalar_lea.sflag [#allocation3], %s103_s22 }
  0x17   : > { %310 = dma.hbm_to_vmem [thread:$0]  (!%p308_p0), %s117_s30, 128, %s119_s29, %s104_s2  }
  0x18   : > { %p124_p3 = pnand %p292_p1, %p123_p2 }
  0x19   : > { %s565_s3 = sand.u32 (!%p124_p3), 1, %s462_s7  }
  0x1a   : > { %127 = sbr.rel (%p124_p3) target bundleno = 55 (0x37), region = 24  ;;  %s293_s4 = sshll.u32 (!%p124_p3), %s565_s3, 3 }
  0x1b   : > { %s130_s5 = scalar_lea.sflag (!%p124_p3), [#allocation3], %s565_s3  ;;  %s133_s12 = scalar_lea.vmem (!%p124_p3), [#allocation2], %s293_s4 }
  0x1f   : > { %449 = dma.done.wait (%p538_p8), %s130_s5, 128  }
  0x20   : > { %451 = vsyncadd (%p538_p8), %s130_s5, 4294967168  ;;  %v480_v0 = vmov 1934713408   ;;  %v155_v2 = vld [vmem:[%s133_s12] sm:$0xff]  ;;  %vm158_vm0 = vcmask 1041408   ;;  %vm160_vm1 = vcmask 1043458  }
  0x21   : > { %v169_v1 = vunpack.c.l.s4 %v480_v0  ;;  %v157_v3 = vrot.slane %v155_v2, 2  ;;  %vm166_vm2 = vcmask 1047556   ;;  %s302_s13 = sshll.u32 %s470_s9, 3  ;;  %s152_s18 = scalar_lea.vmem [#allocation5], %s293_s4 }
  0x22   : > { %s196_s17 = scalar_lea.hbm %s612_s1, %s302_s13  ;;  %s198_s22 = sshll.u32 %s152_s18, 4  ;;  %s199_s22 = int_to_ptr.vmem [resolvable:$true] %s198_s22 }
  0x23   : > { %v159_v4 = vsel %vm158_vm0, %v155_v2, %v157_v3  ;;  %v161_v5 = vsel %vm160_vm1, %v155_v2, %v157_v3  ;;  %v170_v6 = vunpack.c.0.s8 %v169_v1  ;;  %s200_s23 = sshll.u32 %s196_s17, 4  ;;  %s183_s24 = scalar_lea.sflag [#allocation4], %s565_s3  ;;  %s201_s23 = int_to_ptr.hbm [resolvable:$true] %s200_s23 }
  0x24   : > { %v295_v7 = vrot.slane %v161_v5, 6  ;;  %s410_s25 = sshra.s32 %s201_s23, 4  ;;  %s416_s28 = scalar_lea.hbm %s612_s1, 16  ;;  %s411_s25 = int_to_ptr.hbm [resolvable:$true] %s410_s25 }
  0x25   : > { %s412_s26 = scalar_lea.hbm %s411_s25, 8  ;;  %p417_p7 = scmp.lt.s32.totalorder %s411_s25, %s612_s1 }
  0x26   : > { %v167_v8 = vsel %vm166_vm2, %v295_v7, %v159_v4  ;;  %p413_p4 = scmp.ne.s32.totalorder %s411_s25, %s412_s26  ;;  %p418_p8 = scmp.lt.s32.totalorder %s416_s28, %s412_s26 }
  0x27   : > { %v171_v9 = vperm.slane %v167_v8, %v170_v6 }
  0x28   : > { %p414_p5 = pnand %p413_p4, %p542_p9  ;;  %p419_p10 = por %p418_p8, %p417_p7 }
  0x29   : > { %176 = vst [vmem:[#allocation1] ss:$2 sm:$0xff] %v171_v9  ;;  %v172_v10 = vrot.slane %v171_v9, 4 }
  0x2a   : > { %p415_p6 = pneg %p414_p5 }
  0x2b   : > { %v173_v11 = vsel %vm166_vm2, 0.0, %v172_v10 }
  0x2c   : > { %178 = vst [vmem:[#allocation1 + $0x1] ss:$2 sm:$0xff] %v173_v11  ;;  %p420_p13 = pnand %p419_p10, %p415_p6 }
  0x33   : > { %v179_v12 = vld.sshfl [vmem:[#allocation1] sm:$0xff pattern:$0x75643120] }
  0x34   : > { %181 = vst [vmem:[%s152_s18] sm:$0xff] %v179_v12 }
  0x35   : > { %423 = shalt.err (!%p420_p13)
}
  0x36   : > { %305 = dma.vmem_to_hbm [thread:$0]  (%p542_p9), %s199_s22, 128, %s201_s23, %s183_s24  }
  0x37 PF: > { %s212_s2 = sand.u32 1, %s458_s6   ;;  %p312_p0 = pnand %p288_p12, %p549_p11 }
  0x38   : > { %s213_s3 = scalar_lea.sflag [#allocation4], %s212_s2 }
  0x39   : > { %p313_p1 = pneg %p312_p0 }
  0x3b   : > { %453 = dma.done.wait (%p313_p1), %s213_s3, 128  }
  0x3c   : > { %455 = vsyncadd (%p313_p1), %s213_s3, 4294967168  ;;  %s17_s11 = sadd.s32 1, %s478_s11   ;;  %s617_s6 = smov %s462_s7 }
  0x3d   : > { %p14_p2 = scmp.ge.s32.totalorder %s17_s11, 4   ;;  %s618_s7 = smov %s466_s8 }
  0x3e   : > { %s619_s8 = smov %s547_s20  ;;  %s620_s9 = smov %s474_s10 }
  0x3f   : > { %s621_s10 = smov %s623_s14  ;;  %16 = sbr.rel (!%p14_p2) target bundleno = 6 (0x6), region = 70 }
  0x44   :  { %219 = vsyncpa [#allocation3], 1 }
  0x45   :  { %221 = vsyncpa [#allocation3 + $0x1], 1 }
  0x46   :  { %222 = vsyncpa [#allocation4], 1 }
  0x47   :  { %224 = vsyncpa [#allocation4 + $0x1], 1 }

</bundles_post_ra>
